<compile_context>
chip_gen: v5e
topology: v5e:2x2
jax: 0.10.0
libtpu: 0.0.40
codegen_flags: <defaults>
</compile_context>

<pallas_src>
import functools
import math

import jax
import jax.numpy as jnp
from jax import lax
from jax.experimental import pallas as pl
from jax.experimental.pallas import tpu as pltpu


def _loss_stats_kernel(net_ref, tgt_ref, bnd_ref, dice_ref, bd_ref,
                       acc_dice, acc_bd, *, wanted_classes, num_classes,
                       total_s, needs_mask):
    # net_ref : (1, C,  TR, 128) logits block
    # tgt_ref : (1, 1,  TR, 128) integer labels block (int8/uint8/int32)
    # bnd_ref : (1, C,  TR, 128) distance map block (full C; wanted channels
    #                            picked with static vreg loads, no HBM slice)
    # dice_ref: (1, 3, C, 128)   lane-partial [tp, sum_p, cnt_y] per (b, chunk)
    # bd_ref  : (1, 1, 128)      lane-partial sum of p*bound over wanted classes
    # acc_*   : persistent VMEM accumulators over the spatial grid axis
    s = pl.program_id(2)

    @pl.when(s == 0)
    def _init():
        acc_dice[...] = jnp.zeros_like(acc_dice)
        acc_bd[...] = jnp.zeros_like(acc_bd)

    C = num_classes
    TR = net_ref.shape[2]

    logits = net_ref[0].astype(jnp.float32)                    # (C, TR, 128)

    if needs_mask:
        # Absolute-position validity mask: covers both the <128-voxel pad tail
        # and rows of the ragged last spatial tile that are read out of bounds
        # (their contents are undefined, possibly NaN/Inf, so sanitize first).
        tile = pl.program_id(1) * pl.num_programs(2) + s
        rem = total_s - tile * (TR * 128)                      # scalar
        vidx = (lax.broadcasted_iota(jnp.int32, (TR, 128), 0) * 128
                + lax.broadcasted_iota(jnp.int32, (TR, 128), 1))
        valid = vidx < rem                                     # (TR, 128) bool
        logits = jnp.where(valid[None], logits, 0.0)

    # softmax over the leading channel axis (elementwise across vregs, no XLU)
    m = jnp.max(logits, axis=0, keepdims=True)                 # (1, TR, 128)
    e = jnp.exp(logits - m)
    denom = jnp.sum(e, axis=0, keepdims=True)                  # (1, TR, 128)
    inv = pl.reciprocal(denom, approx=True)                    # EUP slot
    if needs_mask:
        inv = inv * valid.astype(jnp.float32)[None]            # pre-mask p
    p = e * inv                                                # (C, TR, 128)

    tgt = tgt_ref[0, 0].astype(jnp.int32)                      # (TR, 128)

    # per-class tp / label counts: static unroll, no float one-hot / iota
    for c in range(C):
        sel = tgt == c
        if needs_mask:
            sel = jnp.logical_and(sel, valid)
        acc_dice[0, c] += jnp.sum(jnp.where(sel, p[c], 0.0), axis=0)    # tp
        acc_dice[2, c] += jnp.sum(sel.astype(jnp.float32), axis=0)      # cnt_y
    acc_dice[1] += jnp.sum(p, axis=1)                          # sum_p (C, 128)

    # boundary term over wanted classes only
    prod = None
    for wc in wanted_classes:                                  # static unroll
        t = p[wc] * bnd_ref[0, wc].astype(jnp.float32)
        prod = t if prod is None else prod + t
    if needs_mask:
        prod = jnp.where(valid, prod, 0.0)                     # OOB bound is garbage
    acc_bd[0] += jnp.sum(prod, axis=0)

    @pl.when(s == pl.num_programs(2) - 1)
    def _finalize():
        dice_ref[0] = acc_dice[...]
        bd_ref[0] = acc_bd[...]


def _vmem_budget_bytes():
    # Cap the scoped-VMEM limit at ~80% of physical VMEM (v7x has only 64 MiB
    # per TensorCore; v5e/v6e have 128 MiB).
    try:
        phys = int(pltpu.get_tpu_info().vmem_capacity_bytes)
    except Exception:
        phys = 64 << 20
    return min(phys * 4 // 5, 100 << 20)


def _pick_tile_rows(requested, SR, C, net_bytes, tgt_bytes, bnd_bytes, budget):
    if SR <= requested:
        return SR                       # single full-extent spatial block

    tr = max(32, (requested // 32) * 32)   # int8 label tiling wants TR % 32 == 0

    def vmem_need(t):
        blk = t * 128
        io = 2 * blk * (C * net_bytes + tgt_bytes + C * bnd_bytes)  # dbl-buffered
        tmp = blk * 4 * (6 * C + 6)     # f32 elementwise temporaries (estimate)
        return io + tmp

    while tr > 32 and vmem_need(tr) > budget:
        tr //= 2
    return tr


def _loss_stats(net, tgt, bnd, *, wanted_classes, total_s, tile_rows,
                num_chunks, needs_mask, vmem_limit):
    """net: (B, C, SR, 128); tgt: (B, 1, SR, 128) int; bnd: (B, C, SR, 128).
    Returns dice stats (B, 3, C) = [tp, sum_p, cnt_y] and bd sums (B,)."""
    B, C, SR, L = net.shape
    assert L == 128
    TR = tile_rows

    n_tiles = -(-SR // TR)
    NC = max(1, min(num_chunks, n_tiles))
    while n_tiles % NC:                 # pick a divisor so every chunk is full
        NC -= 1
    NT = n_tiles // NC

    kernel = functools.partial(
        _loss_stats_kernel,
        wanted_classes=tuple(int(w) for w in wanted_classes),
        num_classes=C, total_s=int(total_s), needs_mask=bool(needs_mask))

    dice_out, bd_out = pl.pallas_call(
        kernel,
        out_shape=(jax.ShapeDtypeStruct((B * NC, 3, C, 128), jnp.float32),
                   jax.ShapeDtypeStruct((B * NC, 1, 128), jnp.float32)),
        grid_spec=pltpu.PrefetchScalarGridSpec(
            num_scalar_prefetch=0,
            grid=(B, NC, NT),
            in_specs=[
                pl.BlockSpec((1, C, TR, 128),
                             lambda b, c, s: (b, 0, c * NT + s, 0)),
                pl.BlockSpec((1, 1, TR, 128),
                             lambda b, c, s: (b, 0, c * NT + s, 0)),
                pl.BlockSpec((1, C, TR, 128),
                             lambda b, c, s: (b, 0, c * NT + s, 0)),
            ],
            out_specs=[
                pl.BlockSpec((1, 3, C, 128),
                             lambda b, c, s: (b * NC + c, 0, 0, 0)),
                pl.BlockSpec((1, 1, 128),
                             lambda b, c, s: (b * NC + c, 0, 0)),
            ],
            scratch_shapes=[pltpu.VMEM((3, C, 128), jnp.float32),
                            pltpu.VMEM((1, 128), jnp.float32)],
        ),
        compiler_params=pltpu.CompilerParams(
            dimension_semantics=("parallel", "parallel", "arbitrary"),
            vmem_limit_bytes=int(vmem_limit)),
    )(net, tgt, bnd)

    dice = dice_out.reshape(B, NC, 3, C, 128).sum(axis=(1, 4))   # (B, 3, C)
    bd = bd_out.reshape(B, NC, 128).sum(axis=(1, 2))             # (B,)
    return dice, bd


def dc_and_bd_loss(net_output, target, bound, *, wanted_classes, smooth=1.0,
                   tile_rows=512, num_chunks=1):
    """net_output: (B, C, X, Y, Z) logits; target: (B, 1, X, Y, Z) labels;
    bound: (B, C, X, Y, Z) distance map.  Returns dice_loss + boundary_loss.
    num_chunks > 1 is only useful on v7x megacore when B == 1."""
    B, C = int(net_output.shape[0]), int(net_output.shape[1])
    S = int(math.prod(net_output.shape[2:]))
    wc = tuple(int(w) for w in wanted_classes)
    assert len(wc) >= 1
    assert tile_rows % 32 == 0 and tile_rows >= 32

    # Flatten spatial dims; logits/bound keep their incoming dtype (bf16
    # upstream halves HBM traffic); labels keep int8/uint8 when supplied.
    net = net_output.reshape(B, C, S)
    bnd = bound.reshape(B, C, S)
    tgt = target.reshape(B, 1, S)

    SR = -(-S // 128)
    pad = SR * 128 - S

    budget = _vmem_budget_bytes()
    TR = _pick_tile_rows(tile_rows, SR, C,
                         net.dtype.itemsize, 4, bnd.dtype.itemsize,
                         budget - (2 << 20))

    if tgt.dtype in (jnp.int8, jnp.uint8) and TR % 32 == 0:
        pass                                   # native int8 tiling (TR % 32 == 0)
    elif tgt.dtype != jnp.int32:
        tgt = tgt.astype(jnp.int32)

    # Pad the flat spatial axis to a multiple of 128 lanes only when needed
    # (typical 3-D patches are 128-aligned -> zero extra HBM passes).
    if pad:
        # TODO(synk): replace this residual (<128 voxel) pad with a manual
        # ragged-tail DMA so non-aligned volumes also avoid the copy.
        net = jnp.pad(net, ((0, 0), (0, 0), (0, pad)))
        tgt = jnp.pad(tgt, ((0, 0), (0, 0), (0, pad)))
        bnd = jnp.pad(bnd, ((0, 0), (0, 0), (0, pad)))
    net = net.reshape(B, C, SR, 128)
    tgt = tgt.reshape(B, 1, SR, 128)
    bnd = bnd.reshape(B, C, SR, 128)

    needs_mask = (pad != 0) or (SR % TR != 0)

    dice, bd = _loss_stats(net, tgt, bnd, wanted_classes=wc, total_s=S,
                           tile_rows=TR, num_chunks=num_chunks,
                           needs_mask=needs_mask, vmem_limit=budget)
    tp, sum_p, cnt_y = dice[:, 0], dice[:, 1], dice[:, 2]           # (B, C)

    # SoftDiceLoss (batch_dice=False, do_bg=True, square=False, mask=None)
    #   fp = sum_p - tp, fn = cnt_y - tp  =>  2*tp + fp + fn = sum_p + cnt_y
    dc = (2.0 * tp + smooth) / (sum_p + cnt_y + smooth)
    dc_loss = -jnp.mean(dc)

    # BDLoss: mean over (B, CW, X, Y, Z) of softmax(x)[:, wanted] * bound[:, wanted]
    bd_loss = jnp.sum(bd) / (B * len(wc) * S)

    return dc_loss + bd_loss


def _reference(net_output, target, bound, wanted_classes, smooth=1.0):
    # pure-JAX reference for sanity checking
    x = jax.nn.softmax(net_output.astype(jnp.float32), axis=1)
    C = net_output.shape[1]
    y = jax.nn.one_hot(target[:, 0].astype(jnp.int32), C, axis=1, dtype=jnp.float32)
    axes = tuple(range(2, net_output.ndim))
    tp = jnp.sum(x * y, axes)
    fp = jnp.sum(x * (1 - y), axes)
    fn = jnp.sum((1 - x) * y, axes)
    dc = (2 * tp + smooth) / (2 * tp + fp + fn + smooth)
    dc_loss = -jnp.mean(dc)
    wcs = jnp.asarray(wanted_classes)
    bd_loss = jnp.mean(x[:, wcs] * bound[:, wcs].astype(jnp.float32))
    return dc_loss + bd_loss


if __name__ == "__main__":
    key = jax.random.PRNGKey(0)
    ks = jax.random.split(key, 9)

    # Case 1: 128-aligned volume (no pad, no mask), all foreground classes,
    # int8 labels accepted at the API boundary.
    B, C, X, Y, Z = 2, 4, 8, 8, 8
    wanted = [1, 2, 3]
    net = jax.random.normal(ks[0], (B, C, X, Y, Z), dtype=jnp.float32)
    tgt = jax.random.randint(ks[1], (B, 1, X, Y, Z), 0, C).astype(jnp.int8)
    bnd = jax.random.normal(ks[2], (B, C, X, Y, Z), dtype=jnp.float32)
    loss = jax.block_until_ready(
        dc_and_bd_loss(net, tgt, bnd, wanted_classes=wanted, smooth=1.0))
    ref = _reference(net, tgt, bnd, wanted, smooth=1.0)
    assert jnp.allclose(loss, ref, atol=1e-3, rtol=1e-3), (loss, ref)

    # Case 2: spatial size not a multiple of 128 (residual pad + mask path),
    # non-contiguous wanted classes, batch of 1.
    B2, C2, X2, Y2, Z2 = 1, 5, 7, 6, 5
    wanted2 = [1, 3]
    net2 = jax.random.normal(ks[3], (B2, C2, X2, Y2, Z2), dtype=jnp.float32)
    tgt2 = jax.random.randint(ks[4], (B2, 1, X2, Y2, Z2), 0, C2)
    bnd2 = jax.random.normal(ks[5], (B2, C2, X2, Y2, Z2), dtype=jnp.float32)
    loss2 = jax.block_until_ready(
        dc_and_bd_loss(net2, tgt2, bnd2, wanted_classes=wanted2, smooth=1.0))
    ref2 = _reference(net2, tgt2, bnd2, wanted2, smooth=1.0)
    assert jnp.allclose(loss2, ref2, atol=1e-3, rtol=1e-3), (loss2, ref2)

    # Case 3: 128-aligned but ragged spatial tiles (mask without pad), chunked
    # grid (num_chunks=2), bf16 logits/bound, uint8 labels with TR=32.
    B3, C3, X3, Y3, Z3 = 1, 3, 8, 40, 40
    wanted3 = [1, 2]
    net3 = jax.random.normal(ks[6], (B3, C3, X3, Y3, Z3)).astype(jnp.bfloat16)
    tgt3 = jax.random.randint(ks[7], (B3, 1, X3, Y3, Z3), 0, C3).astype(jnp.uint8)
    bnd3 = jax.random.normal(ks[8], (B3, C3, X3, Y3, Z3)).astype(jnp.bfloat16)
    loss3 = jax.block_until_ready(
        dc_and_bd_loss(net3, tgt3, bnd3, wanted_classes=wanted3, smooth=1.0,
                       tile_rows=32, num_chunks=2))
    ref3 = _reference(net3, tgt3, bnd3, wanted3, smooth=1.0)
    assert jnp.allclose(loss3, ref3, atol=1e-3, rtol=1e-3), (loss3, ref3)

    print("KERNEL_OK")
</pallas_src>

<mosaic_0001>
module attributes {stable_mosaic.version = 11 : i64} {
  func.func @_loss_stats_kernel(%arg0: i32, %arg1: i32, %arg2: i32, %arg3: memref<1x4x4x128xf32, #tpu.memory_space<vmem>>, %arg4: memref<1x1x4x128xi32, #tpu.memory_space<vmem>>, %arg5: memref<1x4x4x128xf32, #tpu.memory_space<vmem>>, %arg6: memref<1x3x4x128xf32, #tpu.memory_space<vmem>>, %arg7: memref<1x1x128xf32, #tpu.memory_space<vmem>>, %arg8: memref<3x4x128xf32, #tpu.memory_space<vmem>>, %arg9: memref<1x128xf32, #tpu.memory_space<vmem>>) attributes {dimension_semantics = [#tpu.dimension_semantics<parallel>, #tpu.dimension_semantics<parallel>, #tpu.dimension_semantics<arbitrary>], iteration_bounds = array<i64: 2, 1, 1>, scalar_prefetch = 0 : i64, scratch_operands = 2 : i64, tpu.core_type = #tpu.core_type<tc>, window_params = [{transform_indices = @transform_0, window_bounds = array<i64: 1, 4, 4, 128>}, {transform_indices = @transform_1, window_bounds = array<i64: 1, 1, 4, 128>}, {transform_indices = @transform_2, window_bounds = array<i64: 1, 4, 4, 128>}, {transform_indices = @transform_3, window_bounds = array<i64: 1, 3, 4, 128>}, {transform_indices = @transform_4, window_bounds = array<i64: 1, 1, 128>}]} {
    %c0_i32 = arith.constant 0 : i32
    %0 = arith.cmpi eq, %arg2, %c0_i32 : i32
    %1 = arith.extui %0 : i1 to i32
    %c0_i32_0 = arith.constant 0 : i32
    %2 = arith.cmpi ne, %1, %c0_i32_0 : i32
    scf.if %2 {
      %cst_93 = arith.constant 0.000000e+00 : f32
      %139 = vector.broadcast %cst_93 : f32 to vector<3x4x128xf32>
      %c0_94 = arith.constant 0 : index
      %c0_95 = arith.constant 0 : index
      %c0_96 = arith.constant 0 : index
      %140 = vector.load %arg8[%c0_94, %c0_95, %c0_96] : memref<3x4x128xf32, #tpu.memory_space<vmem>>, vector<3x4x128xf32>
      tpu.vector_store %arg8[%c0_94, %c0_95, %c0_96], %139 {strides = array<i32>} : memref<3x4x128xf32, #tpu.memory_space<vmem>>, vector<3x4x128xf32>,
      %cst_97 = arith.constant 0.000000e+00 : f32
      %141 = vector.broadcast %cst_97 : f32 to vector<1x128xf32>
      %c0_98 = arith.constant 0 : index
      %c0_99 = arith.constant 0 : index
      %142 = vector.load %arg9[%c0_98, %c0_99] : memref<1x128xf32, #tpu.memory_space<vmem>>, vector<1x128xf32>
      tpu.vector_store %arg9[%c0_98, %c0_99], %141 {strides = array<i32>} : memref<1x128xf32, #tpu.memory_space<vmem>>, vector<1x128xf32>,
    } else {
    }
    %c0 = arith.constant 0 : index
    %c0_1 = arith.constant 0 : index
    %c0_2 = arith.constant 0 : index
    %c0_3 = arith.constant 0 : index
    %3 = vector.load %arg3[%c0, %c0_1, %c0_2, %c0_3] : memref<1x4x4x128xf32, #tpu.memory_space<vmem>>, vector<1x4x4x128xf32>
    %4 = vector.shape_cast %3 : vector<1x4x4x128xf32> to vector<4x4x128xf32>
    %cst = arith.constant dense<0xFF800000> : vector<4x128xf32>
    %5 = vector.multi_reduction <maximumf>, %4, %cst [0] : vector<4x4x128xf32> to vector<4x128xf32>
    %6 = vector.shape_cast %5 : vector<4x128xf32> to vector<1x4x128xf32>
    %7 = vector.broadcast %6 : vector<1x4x128xf32> to vector<4x4x128xf32>
    %8 = arith.subf %4, %7 : vector<4x4x128xf32>
    %9 = math.exp %8 : vector<4x4x128xf32>
    %cst_4 = arith.constant dense<0.000000e+00> : vector<4x128xf32>
    %10 = vector.multi_reduction <add>, %9, %cst_4 [0] : vector<4x4x128xf32> to vector<4x128xf32>
    %11 = vector.shape_cast %10 : vector<4x128xf32> to vector<1x4x128xf32>
    %12 = tpu.reciprocal %11 {approx = true} : vector<1x4x128xf32> -> vector<1x4x128xf32>
    %13 = vector.broadcast %12 : vector<1x4x128xf32> to vector<4x4x128xf32>
    %14 = arith.mulf %9, %13 : vector<4x4x128xf32>
    %c0_5 = arith.constant 0 : index
    %c0_6 = arith.constant 0 : index
    %c0_7 = arith.constant 0 : index
    %c0_8 = arith.constant 0 : index
    %15 = vector.load %arg4[%c0_5, %c0_6, %c0_7, %c0_8] : memref<1x1x4x128xi32, #tpu.memory_space<vmem>>, vector<1x1x4x128xi32>
    %16 = vector.shape_cast %15 : vector<1x1x4x128xi32> to vector<4x128xi32>
    %c0_i32_9 = arith.constant 0 : i32
    %17 = vector.broadcast %c0_i32_9 : i32 to vector<4x128xi32>
    %18 = arith.cmpi eq, %16, %17 : vector<4x128xi32>
    %c0_10 = arith.constant 0 : index
    %c0_11 = arith.constant 0 : index
    %c0_12 = arith.constant 0 : index
    %19 = vector.load %arg8[%c0_10, %c0_11, %c0_12] : memref<3x4x128xf32, #tpu.memory_space<vmem>>, vector<1x1x128xf32>
    %20 = vector.shape_cast %19 : vector<1x1x128xf32> to vector<128xf32>
    %21 = vector.extract_strided_slice %14 {offsets = [0, 0, 0], sizes = [1, 4, 128], strides = [1, 1, 1]} : vector<4x4x128xf32> to vector<1x4x128xf32>
    %22 = vector.shape_cast %21 : vector<1x4x128xf32> to vector<4x128xf32>
    %cst_13 = arith.constant 0.000000e+00 : f32
    %23 = vector.broadcast %cst_13 : f32 to vector<4x128xf32>
    %24 = arith.select %18, %22, %23 : vector<4x128xi1>, vector<4x128xf32>
    %cst_14 = arith.constant dense<0.000000e+00> : vector<128xf32>
    %25 = vector.multi_reduction <add>, %24, %cst_14 [0] : vector<4x128xf32> to vector<128xf32>
    %26 = arith.addf %20, %25 : vector<128xf32>
    %c0_15 = arith.constant 0 : index
    %c0_16 = arith.constant 0 : index
    %c0_17 = arith.constant 0 : index
    %27 = vector.load %arg8[%c0_15, %c0_16, %c0_17] : memref<3x4x128xf32, #tpu.memory_space<vmem>>, vector<1x1x128xf32>
    %28 = vector.shape_cast %27 : vector<1x1x128xf32> to vector<128xf32>
    %29 = vector.shape_cast %26 : vector<128xf32> to vector<1x1x128xf32>
    tpu.vector_store %arg8[%c0_15, %c0_16, %c0_17], %29 {strides = array<i32>} : memref<3x4x128xf32, #tpu.memory_space<vmem>>, vector<1x1x128xf32>,
    %c2 = arith.constant 2 : index
    %c0_18 = arith.constant 0 : index
    %c0_19 = arith.constant 0 : index
    %30 = vector.load %arg8[%c2, %c0_18, %c0_19] : memref<3x4x128xf32, #tpu.memory_space<vmem>>, vector<1x1x128xf32>
    %31 = vector.shape_cast %30 : vector<1x1x128xf32> to vector<128xf32>
    %32 = arith.extui %18 : vector<4x128xi1> to vector<4x128xi32>
    %33 = arith.sitofp %32 : vector<4x128xi32> to vector<4x128xf32>
    %cst_20 = arith.constant dense<0.000000e+00> : vector<128xf32>
    %34 = vector.multi_reduction <add>, %33, %cst_20 [0] : vector<4x128xf32> to vector<128xf32>
    %35 = arith.addf %31, %34 : vector<128xf32>
    %c2_21 = arith.constant 2 : index
    %c0_22 = arith.constant 0 : index
    %c0_23 = arith.constant 0 : index
    %36 = vector.load %arg8[%c2_21, %c0_22, %c0_23] : memref<3x4x128xf32, #tpu.memory_space<vmem>>, vector<1x1x128xf32>
    %37 = vector.shape_cast %36 : vector<1x1x128xf32> to vector<128xf32>
    %38 = vector.shape_cast %35 : vector<128xf32> to vector<1x1x128xf32>
    tpu.vector_store %arg8[%c2_21, %c0_22, %c0_23], %38 {strides = array<i32>} : memref<3x4x128xf32, #tpu.memory_space<vmem>>, vector<1x1x128xf32>,
    %c1_i32 = arith.constant 1 : i32
    %39 = vector.broadcast %c1_i32 : i32 to vector<4x128xi32>
    %40 = arith.cmpi eq, %16, %39 : vector<4x128xi32>
    %c0_24 = arith.constant 0 : index
    %c1 = arith.constant 1 : index
    %c0_25 = arith.constant 0 : index
    %41 = vector.load %arg8[%c0_24, %c1, %c0_25] : memref<3x4x128xf32, #tpu.memory_space<vmem>>, vector<1x1x128xf32>
    %42 = vector.shape_cast %41 : vector<1x1x128xf32> to vector<128xf32>
    %43 = vector.extract_strided_slice %14 {offsets = [1, 0, 0], sizes = [1, 4, 128], strides = [1, 1, 1]} : vector<4x4x128xf32> to vector<1x4x128xf32>
    %44 = vector.shape_cast %43 : vector<1x4x128xf32> to vector<4x128xf32>
    %cst_26 = arith.constant 0.000000e+00 : f32
    %45 = vector.broadcast %cst_26 : f32 to vector<4x128xf32>
    %46 = arith.select %40, %44, %45 : vector<4x128xi1>, vector<4x128xf32>
    %cst_27 = arith.constant dense<0.000000e+00> : vector<128xf32>
    %47 = vector.multi_reduction <add>, %46, %cst_27 [0] : vector<4x128xf32> to vector<128xf32>
    %48 = arith.addf %42, %47 : vector<128xf32>
    %c0_28 = arith.constant 0 : index
    %c1_29 = arith.constant 1 : index
    %c0_30 = arith.constant 0 : index
    %49 = vector.load %arg8[%c0_28, %c1_29, %c0_30] : memref<3x4x128xf32, #tpu.memory_space<vmem>>, vector<1x1x128xf32>
    %50 = vector.shape_cast %49 : vector<1x1x128xf32> to vector<128xf32>
    %51 = vector.shape_cast %48 : vector<128xf32> to vector<1x1x128xf32>
    tpu.vector_store %arg8[%c0_28, %c1_29, %c0_30], %51 {strides = array<i32>} : memref<3x4x128xf32, #tpu.memory_space<vmem>>, vector<1x1x128xf32>,
    %c2_31 = arith.constant 2 : index
    %c1_32 = arith.constant 1 : index
    %c0_33 = arith.constant 0 : index
    %52 = vector.load %arg8[%c2_31, %c1_32, %c0_33] : memref<3x4x128xf32, #tpu.memory_space<vmem>>, vector<1x1x128xf32>
    %53 = vector.shape_cast %52 : vector<1x1x128xf32> to vector<128xf32>
    %54 = arith.extui %40 : vector<4x128xi1> to vector<4x128xi32>
    %55 = arith.sitofp %54 : vector<4x128xi32> to vector<4x128xf32>
    %cst_34 = arith.constant dense<0.000000e+00> : vector<128xf32>
    %56 = vector.multi_reduction <add>, %55, %cst_34 [0] : vector<4x128xf32> to vector<128xf32>
    %57 = arith.addf %53, %56 : vector<128xf32>
    %c2_35 = arith.constant 2 : index
    %c1_36 = arith.constant 1 : index
    %c0_37 = arith.constant 0 : index
    %58 = vector.load %arg8[%c2_35, %c1_36, %c0_37] : memref<3x4x128xf32, #tpu.memory_space<vmem>>, vector<1x1x128xf32>
    %59 = vector.shape_cast %58 : vector<1x1x128xf32> to vector<128xf32>
    %60 = vector.shape_cast %57 : vector<128xf32> to vector<1x1x128xf32>
    tpu.vector_store %arg8[%c2_35, %c1_36, %c0_37], %60 {strides = array<i32>} : memref<3x4x128xf32, #tpu.memory_space<vmem>>, vector<1x1x128xf32>,
    %c2_i32 = arith.constant 2 : i32
    %61 = vector.broadcast %c2_i32 : i32 to vector<4x128xi32>
    %62 = arith.cmpi eq, %16, %61 : vector<4x128xi32>
    %c0_38 = arith.constant 0 : index
    %c2_39 = arith.constant 2 : index
    %c0_40 = arith.constant 0 : index
    %63 = vector.load %arg8[%c0_38, %c2_39, %c0_40] : memref<3x4x128xf32, #tpu.memory_space<vmem>>, vector<1x1x128xf32>
    %64 = vector.shape_cast %63 : vector<1x1x128xf32> to vector<128xf32>
    %65 = vector.extract_strided_slice %14 {offsets = [2, 0, 0], sizes = [1, 4, 128], strides = [1, 1, 1]} : vector<4x4x128xf32> to vector<1x4x128xf32>
    %66 = vector.shape_cast %65 : vector<1x4x128xf32> to vector<4x128xf32>
    %cst_41 = arith.constant 0.000000e+00 : f32
    %67 = vector.broadcast %cst_41 : f32 to vector<4x128xf32>
    %68 = arith.select %62, %66, %67 : vector<4x128xi1>, vector<4x128xf32>
    %cst_42 = arith.constant dense<0.000000e+00> : vector<128xf32>
    %69 = vector.multi_reduction <add>, %68, %cst_42 [0] : vector<4x128xf32> to vector<128xf32>
    %70 = arith.addf %64, %69 : vector<128xf32>
    %c0_43 = arith.constant 0 : index
    %c2_44 = arith.constant 2 : index
    %c0_45 = arith.constant 0 : index
    %71 = vector.load %arg8[%c0_43, %c2_44, %c0_45] : memref<3x4x128xf32, #tpu.memory_space<vmem>>, vector<1x1x128xf32>
    %72 = vector.shape_cast %71 : vector<1x1x128xf32> to vector<128xf32>
    %73 = vector.shape_cast %70 : vector<128xf32> to vector<1x1x128xf32>
    tpu.vector_store %arg8[%c0_43, %c2_44, %c0_45], %73 {strides = array<i32>} : memref<3x4x128xf32, #tpu.memory_space<vmem>>, vector<1x1x128xf32>,
    %c2_46 = arith.constant 2 : index
    %c2_47 = arith.constant 2 : index
    %c0_48 = arith.constant 0 : index
    %74 = vector.load %arg8[%c2_46, %c2_47, %c0_48] : memref<3x4x128xf32, #tpu.memory_space<vmem>>, vector<1x1x128xf32>
    %75 = vector.shape_cast %74 : vector<1x1x128xf32> to vector<128xf32>
    %76 = arith.extui %62 : vector<4x128xi1> to vector<4x128xi32>
    %77 = arith.sitofp %76 : vector<4x128xi32> to vector<4x128xf32>
    %cst_49 = arith.constant dense<0.000000e+00> : vector<128xf32>
    %78 = vector.multi_reduction <add>, %77, %cst_49 [0] : vector<4x128xf32> to vector<128xf32>
    %79 = arith.addf %75, %78 : vector<128xf32>
    %c2_50 = arith.constant 2 : index
    %c2_51 = arith.constant 2 : index
    %c0_52 = arith.constant 0 : index
    %80 = vector.load %arg8[%c2_50, %c2_51, %c0_52] : memref<3x4x128xf32, #tpu.memory_space<vmem>>, vector<1x1x128xf32>
    %81 = vector.shape_cast %80 : vector<1x1x128xf32> to vector<128xf32>
    %82 = vector.shape_cast %79 : vector<128xf32> to vector<1x1x128xf32>
    tpu.vector_store %arg8[%c2_50, %c2_51, %c0_52], %82 {strides = array<i32>} : memref<3x4x128xf32, #tpu.memory_space<vmem>>, vector<1x1x128xf32>,
    %c3_i32 = arith.constant 3 : i32
    %83 = vector.broadcast %c3_i32 : i32 to vector<4x128xi32>
    %84 = arith.cmpi eq, %16, %83 : vector<4x128xi32>
    %c0_53 = arith.constant 0 : index
    %c3 = arith.constant 3 : index
    %c0_54 = arith.constant 0 : index
    %85 = vector.load %arg8[%c0_53, %c3, %c0_54] : memref<3x4x128xf32, #tpu.memory_space<vmem>>, vector<1x1x128xf32>
    %86 = vector.shape_cast %85 : vector<1x1x128xf32> to vector<128xf32>
    %87 = vector.extract_strided_slice %14 {offsets = [3, 0, 0], sizes = [1, 4, 128], strides = [1, 1, 1]} : vector<4x4x128xf32> to vector<1x4x128xf32>
    %88 = vector.shape_cast %87 : vector<1x4x128xf32> to vector<4x128xf32>
    %cst_55 = arith.constant 0.000000e+00 : f32
    %89 = vector.broadcast %cst_55 : f32 to vector<4x128xf32>
    %90 = arith.select %84, %88, %89 : vector<4x128xi1>, vector<4x128xf32>
    %cst_56 = arith.constant dense<0.000000e+00> : vector<128xf32>
    %91 = vector.multi_reduction <add>, %90, %cst_56 [0] : vector<4x128xf32> to vector<128xf32>
    %92 = arith.addf %86, %91 : vector<128xf32>
    %c0_57 = arith.constant 0 : index
    %c3_58 = arith.constant 3 : index
    %c0_59 = arith.constant 0 : index
    %93 = vector.load %arg8[%c0_57, %c3_58, %c0_59] : memref<3x4x128xf32, #tpu.memory_space<vmem>>, vector<1x1x128xf32>
    %94 = vector.shape_cast %93 : vector<1x1x128xf32> to vector<128xf32>
    %95 = vector.shape_cast %92 : vector<128xf32> to vector<1x1x128xf32>
    tpu.vector_store %arg8[%c0_57, %c3_58, %c0_59], %95 {strides = array<i32>} : memref<3x4x128xf32, #tpu.memory_space<vmem>>, vector<1x1x128xf32>,
    %c2_60 = arith.constant 2 : index
    %c3_61 = arith.constant 3 : index
    %c0_62 = arith.constant 0 : index
    %96 = vector.load %arg8[%c2_60, %c3_61, %c0_62] : memref<3x4x128xf32, #tpu.memory_space<vmem>>, vector<1x1x128xf32>
    %97 = vector.shape_cast %96 : vector<1x1x128xf32> to vector<128xf32>
    %98 = arith.extui %84 : vector<4x128xi1> to vector<4x128xi32>
    %99 = arith.sitofp %98 : vector<4x128xi32> to vector<4x128xf32>
    %cst_63 = arith.constant dense<0.000000e+00> : vector<128xf32>
    %100 = vector.multi_reduction <add>, %99, %cst_63 [0] : vector<4x128xf32> to vector<128xf32>
    %101 = arith.addf %97, %100 : vector<128xf32>
    %c2_64 = arith.constant 2 : index
    %c3_65 = arith.constant 3 : index
    %c0_66 = arith.constant 0 : index
    %102 = vector.load %arg8[%c2_64, %c3_65, %c0_66] : memref<3x4x128xf32, #tpu.memory_space<vmem>>, vector<1x1x128xf32>
    %103 = vector.shape_cast %102 : vector<1x1x128xf32> to vector<128xf32>
    %104 = vector.shape_cast %101 : vector<128xf32> to vector<1x1x128xf32>
    tpu.vector_store %arg8[%c2_64, %c3_65, %c0_66], %104 {strides = array<i32>} : memref<3x4x128xf32, #tpu.memory_space<vmem>>, vector<1x1x128xf32>,
    %c1_67 = arith.constant 1 : index
    %c0_68 = arith.constant 0 : index
    %c0_69 = arith.constant 0 : index
    %105 = vector.load %arg8[%c1_67, %c0_68, %c0_69] : memref<3x4x128xf32, #tpu.memory_space<vmem>>, vector<1x4x128xf32>
    %106 = vector.shape_cast %105 : vector<1x4x128xf32> to vector<4x128xf32>
    %cst_70 = arith.constant dense<0.000000e+00> : vector<4x128xf32>
    %107 = vector.multi_reduction <add>, %14, %cst_70 [1] : vector<4x4x128xf32> to vector<4x128xf32>
    %108 = arith.addf %106, %107 : vector<4x128xf32>
    %c1_71 = arith.constant 1 : index
    %c0_72 = arith.constant 0 : index
    %c0_73 = arith.constant 0 : index
    %109 = vector.load %arg8[%c1_71, %c0_72, %c0_73] : memref<3x4x128xf32, #tpu.memory_space<vmem>>, vector<1x4x128xf32>
    %110 = vector.shape_cast %109 : vector<1x4x128xf32> to vector<4x128xf32>
    %111 = vector.shape_cast %108 : vector<4x128xf32> to vector<1x4x128xf32>
    tpu.vector_store %arg8[%c1_71, %c0_72, %c0_73], %111 {strides = array<i32>} : memref<3x4x128xf32, #tpu.memory_space<vmem>>, vector<1x4x128xf32>,
    %112 = vector.extract_strided_slice %14 {offsets = [1, 0, 0], sizes = [1, 4, 128], strides = [1, 1, 1]} : vector<4x4x128xf32> to vector<1x4x128xf32>
    %113 = vector.shape_cast %112 : vector<1x4x128xf32> to vector<4x128xf32>
    %c0_74 = arith.constant 0 : index
    %c1_75 = arith.constant 1 : index
    %c0_76 = arith.constant 0 : index
    %c0_77 = arith.constant 0 : index
    %114 = vector.load %arg5[%c0_74, %c1_75, %c0_76, %c0_77] : memref<1x4x4x128xf32, #tpu.memory_space<vmem>>, vector<1x1x4x128xf32>
    %115 = vector.shape_cast %114 : vector<1x1x4x128xf32> to vector<4x128xf32>
    %116 = arith.mulf %113, %115 : vector<4x128xf32>
    %117 = vector.extract_strided_slice %14 {offsets = [2, 0, 0], sizes = [1, 4, 128], strides = [1, 1, 1]} : vector<4x4x128xf32> to vector<1x4x128xf32>
    %118 = vector.shape_cast %117 : vector<1x4x128xf32> to vector<4x128xf32>
    %c0_78 = arith.constant 0 : index
    %c2_79 = arith.constant 2 : index
    %c0_80 = arith.constant 0 : index
    %c0_81 = arith.constant 0 : index
    %119 = vector.load %arg5[%c0_78, %c2_79, %c0_80, %c0_81] : memref<1x4x4x128xf32, #tpu.memory_space<vmem>>, vector<1x1x4x128xf32>
    %120 = vector.shape_cast %119 : vector<1x1x4x128xf32> to vector<4x128xf32>
    %121 = arith.mulf %118, %120 : vector<4x128xf32>
    %122 = arith.addf %116, %121 : vector<4x128xf32>
    %123 = vector.extract_strided_slice %14 {offsets = [3, 0, 0], sizes = [1, 4, 128], strides = [1, 1, 1]} : vector<4x4x128xf32> to vector<1x4x128xf32>
    %124 = vector.shape_cast %123 : vector<1x4x128xf32> to vector<4x128xf32>
    %c0_82 = arith.constant 0 : index
    %c3_83 = arith.constant 3 : index
    %c0_84 = arith.constant 0 : index
    %c0_85 = arith.constant 0 : index
    %125 = vector.load %arg5[%c0_82, %c3_83, %c0_84, %c0_85] : memref<1x4x4x128xf32, #tpu.memory_space<vmem>>, vector<1x1x4x128xf32>
    %126 = vector.shape_cast %125 : vector<1x1x4x128xf32> to vector<4x128xf32>
    %127 = arith.mulf %124, %126 : vector<4x128xf32>
    %128 = arith.addf %122, %127 : vector<4x128xf32>
    %c0_86 = arith.constant 0 : index
    %c0_87 = arith.constant 0 : index
    %129 = vector.load %arg9[%c0_86, %c0_87] : memref<1x128xf32, #tpu.memory_space<vmem>>, vector<1x128xf32>
    %130 = vector.shape_cast %129 : vector<1x128xf32> to vector<128xf32>
    %cst_88 = arith.constant dense<0.000000e+00> : vector<128xf32>
    %131 = vector.multi_reduction <add>, %128, %cst_88 [0] : vector<4x128xf32> to vector<128xf32>
    %132 = arith.addf %130, %131 : vector<128xf32>
    %c0_89 = arith.constant 0 : index
    %c0_90 = arith.constant 0 : index
    %133 = vector.load %arg9[%c0_89, %c0_90] : memref<1x128xf32, #tpu.memory_space<vmem>>, vector<1x128xf32>
    %134 = vector.shape_cast %133 : vector<1x128xf32> to vector<128xf32>
    %135 = vector.shape_cast %132 : vector<128xf32> to vector<1x128xf32>
    tpu.vector_store %arg9[%c0_89, %c0_90], %135 {strides = array<i32>} : memref<1x128xf32, #tpu.memory_space<vmem>>, vector<1x128xf32>,
    %c0_i32_91 = arith.constant 0 : i32
    %136 = arith.cmpi eq, %arg2, %c0_i32_91 : i32
    %137 = arith.extui %136 : i1 to i32
    %c0_i32_92 = arith.constant 0 : i32
    %138 = arith.cmpi ne, %137, %c0_i32_92 : i32
    scf.if %138 {
      %c0_93 = arith.constant 0 : index
      %c0_94 = arith.constant 0 : index
      %c0_95 = arith.constant 0 : index
      %139 = vector.load %arg8[%c0_93, %c0_94, %c0_95] : memref<3x4x128xf32, #tpu.memory_space<vmem>>, vector<3x4x128xf32>
      %c0_96 = arith.constant 0 : index
      %c0_97 = arith.constant 0 : index
      %c0_98 = arith.constant 0 : index
      %c0_99 = arith.constant 0 : index
      %140 = vector.load %arg6[%c0_96, %c0_97, %c0_98, %c0_99] : memref<1x3x4x128xf32, #tpu.memory_space<vmem>>, vector<1x3x4x128xf32>
      %141 = vector.shape_cast %140 : vector<1x3x4x128xf32> to vector<3x4x128xf32>
      %142 = vector.shape_cast %139 : vector<3x4x128xf32> to vector<1x3x4x128xf32>
      tpu.vector_store %arg6[%c0_96, %c0_97, %c0_98, %c0_99], %142 {strides = array<i32>} : memref<1x3x4x128xf32, #tpu.memory_space<vmem>>, vector<1x3x4x128xf32>,
      %c0_100 = arith.constant 0 : index
      %c0_101 = arith.constant 0 : index
      %143 = vector.load %arg9[%c0_100, %c0_101] : memref<1x128xf32, #tpu.memory_space<vmem>>, vector<1x128xf32>
      %c0_102 = arith.constant 0 : index
      %c0_103 = arith.constant 0 : index
      %c0_104 = arith.constant 0 : index
      %144 = vector.load %arg7[%c0_102, %c0_103, %c0_104] : memref<1x1x128xf32, #tpu.memory_space<vmem>>, vector<1x1x128xf32>
      %145 = vector.shape_cast %144 : vector<1x1x128xf32> to vector<1x128xf32>
      %146 = vector.shape_cast %143 : vector<1x128xf32> to vector<1x1x128xf32>
      tpu.vector_store %arg7[%c0_102, %c0_103, %c0_104], %146 {strides = array<i32>} : memref<1x1x128xf32, #tpu.memory_space<vmem>>, vector<1x1x128xf32>,
    } else {
    }
    return
  }
  func.func @transform_0(%arg0: i32, %arg1: i32, %arg2: i32) -> (i32, i32, i32, i32) {
    %c1_i32 = arith.constant 1 : i32
    %0 = arith.muli %arg1, %c1_i32 : i32
    %1 = arith.addi %0, %arg2 : i32
    %c0_i32 = arith.constant 0 : i32
    %c0_i32_0 = arith.constant 0 : i32
    %c0_i32_1 = arith.constant 0 : i32
    return %arg0, %c0_i32, %1, %c0_i32_0 : i32, i32, i32, i32
  }
  func.func @transform_1(%arg0: i32, %arg1: i32, %arg2: i32) -> (i32, i32, i32, i32) {
    %c1_i32 = arith.constant 1 : i32
    %0 = arith.muli %arg1, %c1_i32 : i32
    %1 = arith.addi %0, %arg2 : i32
    %c0_i32 = arith.constant 0 : i32
    %c0_i32_0 = arith.constant 0 : i32
    %c0_i32_1 = arith.constant 0 : i32
    return %arg0, %c0_i32, %1, %c0_i32_0 : i32, i32, i32, i32
  }
  func.func @transform_2(%arg0: i32, %arg1: i32, %arg2: i32) -> (i32, i32, i32, i32) {
    %c1_i32 = arith.constant 1 : i32
    %0 = arith.muli %arg1, %c1_i32 : i32
    %1 = arith.addi %0, %arg2 : i32
    %c0_i32 = arith.constant 0 : i32
    %c0_i32_0 = arith.constant 0 : i32
    %c0_i32_1 = arith.constant 0 : i32
    return %arg0, %c0_i32, %1, %c0_i32_0 : i32, i32, i32, i32
  }
  func.func @transform_3(%arg0: i32, %arg1: i32, %arg2: i32) -> (i32, i32, i32, i32) {
    %c1_i32 = arith.constant 1 : i32
    %0 = arith.muli %arg0, %c1_i32 : i32
    %1 = arith.addi %0, %arg1 : i32
    %c0_i32 = arith.constant 0 : i32
    %c0_i32_0 = arith.constant 0 : i32
    %c0_i32_1 = arith.constant 0 : i32
    %c0_i32_2 = arith.constant 0 : i32
    return %1, %c0_i32, %c0_i32_0, %c0_i32_1 : i32, i32, i32, i32
  }
  func.func @transform_4(%arg0: i32, %arg1: i32, %arg2: i32) -> (i32, i32, i32) {
    %c1_i32 = arith.constant 1 : i32
    %0 = arith.muli %arg0, %c1_i32 : i32
    %1 = arith.addi %0, %arg1 : i32
    %c0_i32 = arith.constant 0 : i32
    %c0_i32_0 = arith.constant 0 : i32
    %c0_i32_1 = arith.constant 0 : i32
    return %1, %c0_i32, %c0_i32_0 : i32, i32, i32
  }
}

</mosaic_0001>

<bundles_post_ra>
// kernel: tpu_custom_call.1
= control target key start
LH: loop header
LB: loop body
LE: loop exit
PB: predicated region body
PF: predicated region fallthrough
CT: control target
= control target key end

     0   :  { %s1376_s0 = inlined_call_operand.hbm [shape: f32[2,4,4,128], index: 0, kind: input, shape index: {}]   ;;  %s1377_s1 = inlined_call_operand.hbm [shape: s32[2,1,4,128], index: 1, kind: input, shape index: {}]   ;;  %s1378_s2 = inlined_call_operand.hbm [shape: f32[2,4,4,128], index: 2, kind: input, shape index: {}]   ;;  %s1379_s3 = inlined_call_operand.hbm [shape: f32[2,3,4,128], index: 3, kind: output, shape index: {0}]   ;;  %s1380_s4 = inlined_call_operand.hbm [shape: f32[2,1,128], index: 4, kind: output, shape index: {1}]  }
   0x1   :  { %1386 = sst [smem:[#allocation22_spill]] %s1377_s1 }
   0x2   :  { %10 = vsyncpa [#allocation5], 0 }
   0x3   :  { %12 = vsyncpa [#allocation5 + $0x1], 0 }
   0x4   :  { %13 = vsyncpa [#allocation8], 0 }
   0x5   :  { %15 = vsyncpa [#allocation8 + $0x1], 0 }
   0x6   :  { %16 = vsyncpa [#allocation6], 0 }
   0x7   :  { %18 = vsyncpa [#allocation6 + $0x1], 0 }
   0x8   :  { %19 = vsyncpa [#allocation12], 0 }
   0x9   :  { %21 = vsyncpa [#allocation12 + $0x1], 0  ;;  %s1131_s15 = smov 0   ;;  %s1133_s16 = smov 0  }
   0xa   :  { %s1135_s17 = smov 0   ;;  %s1137_s18 = smov 0  }
   0xb   :  { %s1139_s19 = smov 0   ;;  %s1141_s20 = smov 0  }
   0xc LB: > { %1387 = sst [smem:[#allocation17_spill]] %s1087_s17  ;;  %s1162_s21 = sadd.s32 4294967295, %s1099_s20   ;;  %s1099_s20 = sphi %s1141_s20, %s27_s20   ;;  %s1095_s19 = sphi %s1139_s19, %s1407_s19   ;;  %s1091_s18 = sphi %s1137_s18, %s1406_s18   ;;  %s1087_s17 = sphi %s1135_s17, %s1402_s17   ;;  %s1083_s16 = sphi %s1133_s16, %s1405_s16   ;;  %s1079_s15 = sphi %s1131_s15, %s1404_s15  }
   0xd   : > { %1388 = sst [smem:[#allocation18_spill]] %s1099_s20  ;;  %s770_s22 = sadd.s32 4294967294, %s1099_s20  }
   0xe   : > { %s46_s23 = sadd.s32 1, %s1095_s19  ;;  %s57_s24 = sadd.s32 1, %s1087_s17 }
   0xf   : > { %p48_p0 = scmp.ge.s32.totalorder %s46_s23, 2  ;;  %p64_p1 = scmp.ne.s32.totalorder %s1087_s17, %s1083_s16 }
  0x10   : > { %p65_p2 = scmp.eq.s32.totalorder %s1099_s20, 0  ;;  %p70_p3 = scmp.ne.s32.totalorder %s1083_s16, %s1079_s15 }
  0x11   : > { %s1409_s23 = smov (%p48_p0, %s46_s23), 0  ;;  %p71_p5 = scmp.eq.s32.totalorder %s1162_s21, 0 }
  0x12   : > { %1389 = sst [smem:[#allocation19_spill]] %s1409_s23  ;;  %p1174_p4 = por %p65_p2, %p64_p1 }
  0x13   : > { %s52_s26 = ssub.s32 %s1095_s19, %s1409_s23  ;;  %p156_p6 = scmp.eq.s32.totalorder %s1162_s21, 1 }
  0x14   : > { %p55_p7 = scmp.eq.s32.totalorder %s52_s26, 0  ;;  %p1182_p8 = por %p71_p5, %p70_p3 }
  0x15   : > { %p1186_p9 = por %p156_p6, %p64_p1  ;;  %p162_p10 = scmp.eq.s32.totalorder %s770_s22, 1 }
  0x16   : > { %s1191_s29 = scalar_select %p55_p7, %s1087_s17, %s57_s24  }
  0x17   : > { %p1193_p11 = por %p162_p10, %p70_p3  ;;  %p772_p12 = scmp.ge.s32.totalorder %s1099_s20, 2 }
  0x18   : > { %1393 = sst [smem:[#allocation20_spill]] %s1191_s29  ;;  %p826_p13 = scmp.lt.s32.totalorder %s1099_s20, 2 }
  0x19   : > { %s1394_s30 = scalar_select %p1193_p11, 1, 0 }
  0x1a   : > { %s1200_s5 = sand.u32 1, %s1087_s17   ;;  %s234_s7 = sand.u32 1, %s1099_s20  }
  0x1b   : > { %1395 = sst [smem:[#allocation21_spill]] %s1394_s30  ;;  %s773_s6 = sshll.u32 %s1200_s5, 4 }
  0x1c   : > { %p1206_p0 = pnand %p826_p13, %p1174_p4  ;;  %s776_s9 = sshll.u32 %s1200_s5, 2 }
  0x1d   : > { %s777_s10 = sshll.u32 %s1095_s19, 2  ;;  %s1397_s1 = sld [smem:[#allocation22_spill]] }
  0x1e   : > { %s238_s14 = scalar_lea.vmem [#allocation7], %s776_s9  ;;  %s235_s26 = scalar_lea.sflag [#allocation8], %s234_s7 }
  0x1f   : > { %s248_s22 = sshll.u32 %s238_s14, 4  ;;  %s259_s25 = scalar_lea.vmem [#allocation9], %s773_s6  ;;  %s249_s22 = int_to_ptr.vmem [resolvable:$true] %s248_s22 }
  0x20   : > { %s269_s23 = sshll.u32 %s259_s25, 4  ;;  %p781_p1 = scmp.ge.s32.totalorder %s1099_s20, 1  ;;  %s270_s23 = int_to_ptr.vmem [resolvable:$true] %s269_s23 }
  0x21   : > { %p277_p2 = scmp.lt.s32.totalorder %s1099_s20, 3  ;;  %s795_s9 = sshll.u32 %s1095_s19, 4 }
  0x22   : > { %s221_s12 = scalar_lea.hbm %s1376_s0, %s795_s9  ;;  %s214_s7 = scalar_lea.vmem [#allocation4], %s773_s6 }
  0x23   : > { %s244_s13 = scalar_lea.hbm %s1397_s1, %s777_s10  ;;  %p1219_p3 = pnand %p781_p1, %p277_p2 }
  0x24   : > { %s246_s24 = sshll.u32 %s244_s13, 4  ;;  %s224_s13 = sshll.u32 %s214_s7, 4  ;;  %s247_s24 = int_to_ptr.hbm [resolvable:$true] %s246_s24  ;;  %s225_s13 = int_to_ptr.vmem [resolvable:$true] %s224_s13 }
  0x25   : > { %815 = dma.hbm_to_vmem [thread:$0]  (!%p1206_p0), %s247_s24, 64, %s249_s22, %s235_s26  }
  0x26   : > { %s222_s14 = sshll.u32 %s221_s12, 4  ;;  %s266_s25 = scalar_lea.hbm %s1378_s2, %s795_s9  ;;  %s223_s14 = int_to_ptr.hbm [resolvable:$true] %s222_s14 }
  0x27   : > { %s211_s1 = scalar_lea.sflag [#allocation5], %s1200_s5  ;;  %s1101_s17 = smov 64  }
  0x28   : > { %s1102_s20 = smov 4   ;;  %s267_s30 = sshll.u32 %s266_s25, 4  ;;  %s268_s30 = int_to_ptr.hbm [resolvable:$true] %s267_s30 }
  0x29   : > { %812 = dma.hbm_to_vmem [thread:$0]  (!%p1206_p0), %s223_s14, 256, %s225_s13, %s211_s1, %s1101_s17, %s1101_s17, %s1102_s20  }
  0x2a   : > { %818 = dma.hbm_to_vmem [thread:$0]  (!%p1206_p0), %s268_s30, 256, %s270_s23, %s235_s26, %s1101_s17, %s1101_s17, %s1102_s20  }
  0x2b   : > { %281 = sbr.rel (%p1219_p3) target bundleno = 136 (0x88), region = 32  ;;  %s1238_s6 = sand.u32 (!%p1219_p3), 1, %s1083_s16  }
  0x2c   : > { %s782_s9 = sshll.u32 (!%p1219_p3), %s1238_s6, 4  ;;  %s284_s5 = scalar_lea.sflag (!%p1219_p3), [#allocation5], %s1238_s6 }
  0x2d   : > { %s287_s10 = scalar_lea.vmem (!%p1219_p3), [#allocation4], %s782_s9 }
  0x30   : > { %1062 = dma.done.wait (%p1182_p8), %s284_s5, 256  }
  0x31   : > { %1064 = vsyncadd (%p1182_p8), %s284_s5, 4294967040  ;;  %s293_s1 = sand.u32 1, %s1162_s21   ;;  %s783_s17 = sshll.u32 %s1238_s6, 2 }
  0x32   : > { %s294_s20 = scalar_lea.sflag [#allocation8], %s293_s1  ;;  %s297_s23 = scalar_lea.vmem [#allocation7], %s783_s17 }
  0x33   : > { %1066 = dma.done.wait (%p1182_p8), %s294_s20, 320  }
  0x34   : > { %1068 = vsyncadd (%p1182_p8), %s294_s20, 4294966976  ;;  %v1103_v0 = vmov 0.0   ;;  %vm364_vm0 = vcmask 1043456   ;;  %v360_v1 = vld [vmem:[%s287_s10] sm:$0xf]  ;;  %s797_s21 = smul.u32 12, %s1238_s6 }
  0x35   : > { %356 = vst [vmem:[#allocation2] sm:$0xf] %v1103_v0  ;;  %v361_v2 = vld [vmem:[%s287_s10 + $0x4] sm:$0xf]  ;;  %v362_v3 = vld [vmem:[%s287_s10 + $0x8] sm:$0xf] }
  0x36   : > { %357 = vst [vmem:[#allocation2 + $0x4] sm:$0xf] %v1103_v0  ;;  %v363_v4 = vld [vmem:[%s287_s10 + $0xc] sm:$0xf]  ;;  %v365_v5 = vsel %vm364_vm0, %v360_v1, -inf  ;;  %v366_v6 = vsel %vm364_vm0, %v361_v2, -inf }
  0x37   : > { %358 = vst [vmem:[#allocation2 + $0x8] sm:$0xf] %v1103_v0  ;;  %v367_v7 = vsel %vm364_vm0, %v362_v3, -inf  ;;  %v368_v8 = vsel %vm364_vm0, %v363_v4, -inf  ;;  %v369_v9 = vmax.f32 %v365_v5, %v366_v6  ;;  %v1258_v10 = vld [vmem:[%s297_s23] sm:$0xf] }
  0x38   : > { %359 = vst [vmem:[#allocation3] sm:$0x1] %v1103_v0  ;;  %v370_v11 = vmax.f32 %v367_v7, %v368_v8  ;;  %vm397_vm1 = vcmp.eq.s32.totalorder %v1258_v10, 0  ;;  %vm422_vm2 = vcmp.eq.s32.totalorder %v1258_v10, 1  ;;  %vm446_vm3 = vcmp.eq.s32.totalorder %v1258_v10, 2  ;;  %s1309_s27 = scalar_lea.vmem [#allocation10], %s797_s21 }
  0x39   : > { %v785_v17 = vsel %vm397_vm1, 1.0, %v1103_v0  ;;  %vm470_vm4 = vcmp.eq.s32.totalorder %v1258_v10, 3  ;;  %v786_v23 = vsel %vm422_vm2, 1.0, %v1103_v0  ;;  %v787_v24 = vsel %vm446_vm3, 1.0, %v1103_v0  ;;  %s307_s29 = scalar_lea.vmem [#allocation9], %s782_s9  ;;  %s798_s30 = smul.u32 12, %s1091_s18 }
  0x3a   : > { %v371_v12 = vmax.f32 %v369_v9, %v370_v11  ;;  %v413_v22 = vsel %vm364_vm0, %v785_v17, 0.0  ;;  %v437_v26 = vsel %vm364_vm0, %v786_v23, 0.0  ;;  %v461_v27 = vsel %vm364_vm0, %v787_v24, 0.0  ;;  %s587_s12 = sshll.u32 %s1309_s27, 4  ;;  %s570_s13 = scalar_lea.sflag [#allocation6], %s1238_s6  ;;  %s588_s12 = int_to_ptr.vmem [resolvable:$true] %s587_s12 }
  0x3b   : > { %v414_v25 = vrot.slane %v413_v22, 4  ;;  %v438_v28 = vrot.slane %v437_v26, 4  ;;  %v462_v29 = vrot.slane %v461_v27, 4  ;;  %v788_v30 = vsel %vm470_vm4, 1.0, %v1103_v0  ;;  %s586_s11 = scalar_lea.hbm %s1379_s3, %s798_s30  ;;  %s1001_s9 = scalar_lea.hbm %s1379_s3, 24 }
  0x3c   : > { %v372_v13 = vsub.f32 %v360_v1, %v371_v12  ;;  %v373_v14 = vsub.f32 %v361_v2, %v371_v12  ;;  %v374_v15 = vsub.f32 %v362_v3, %v371_v12  ;;  %v375_v16 = vsub.f32 %v363_v4, %v371_v12  ;;  %s589_s7 = sshll.u32 %s586_s11, 4  ;;  %s590_s7 = int_to_ptr.hbm [resolvable:$true] %s589_s7 }
  0x3d   : > { %v415_v31 = vadd.f32 %v414_v25, %v413_v22  ;;  %v485_v32 = vsel %vm364_vm0, %v788_v30, 0.0  ;;  %v439_v33 = vadd.f32 %v438_v28, %v437_v26  ;;  %v463_v34 = vadd.f32 %v462_v29, %v461_v27  ;;  %s995_s14 = sshra.s32 %s590_s7, 4  ;;  %s996_s14 = int_to_ptr.hbm [resolvable:$true] %s995_s14 }
  0x3e   : > { %v376_v18 = vmul.f32 1.442695, %v372_v13  ;;  %v378_v19 = vmul.f32 1.442695, %v373_v14  ;;  %v380_v20 = vmul.f32 1.442695, %v374_v15  ;;  %p1002_p7 = scmp.lt.s32.totalorder %s996_s14, %s1379_s3 }
  0x3f   : > { %v382_v21 = vmul.f32 1.442695, %v375_v16  ;;  %v486_v35 = vrot.slane %v485_v32, 4  ;;  %v416_v36 = vrot.slane %v415_v31, 2  ;;  %v440_v37 = vrot.slane %v439_v33, 2  ;;  %s997_s22 = scalar_lea.hbm %s996_s14, 12 }
  0x40   : > { %881 = vpow2.f32 %v376_v18  ;;  %v464_v38 = vrot.slane %v463_v34, 2  ;;  %v410_v53 = vld [vmem:[#allocation2 + $0x8] sm:$0x1]  ;;  %v434_v58 = vld [vmem:[#allocation2 + $0x9] sm:$0x1]  ;;  %vm528_vm5 = vcmask 1041409   ;;  %p998_p4 = scmp.ne.s32.totalorder %s996_s14, %s997_s22  ;;  %p1003_p8 = scmp.lt.s32.totalorder %s1001_s9, %s997_s22 }
  0x41   : > { %883 = vpow2.f32 %v378_v19  ;;  %v487_v39 = vadd.f32 %v486_v35, %v485_v32  ;;  %v417_v41 = vadd.f32 %v416_v36, %v415_v31  ;;  %v441_v44 = vadd.f32 %v440_v37, %v439_v33  ;;  %v458_v62 = vld [vmem:[#allocation2 + $0xa] sm:$0x1]  ;;  %v482_v2 = vld [vmem:[#allocation2 + $0xb] sm:$0x1] }
  0x42   : > { %885 = vpow2.f32 %v380_v20  ;;  %v465_v45 = vadd.f32 %v464_v38, %v463_v34  ;;  %vm530_vm6 = vcmask 1042434   ;;  %vm532_vm7 = vcmask 1043459   ;;  %p999_p5 = pnand %p998_p4, %p1186_p9  ;;  %p1004_p10 = por %p1003_p8, %p1002_p7 }
  0x43   : > { %887 = vpow2.f32 %v382_v21  ;;  %v488_v46 = vrot.slane %v487_v39, 2  ;;  %v418_v49 = vrot.slane %v417_v41, 1  ;;  %v442_v54 = vrot.slane %v441_v44, 1 }
  0x44   : > { %v466_v59 = vrot.slane %v465_v45, 1  ;;  %p1000_p6 = pneg %p999_p5 }
  0x45   : > { %v489_v55 = vadd.f32 %v488_v46, %v487_v39  ;;  %v419_v57 = vadd.f32 %v418_v49, %v417_v41  ;;  %v443_v61 = vadd.f32 %v442_v54, %v441_v44 }
  0x46   : > { %v882_v40 = vpop.eup %881  ;;  %v467_v1 = vadd.f32 %v466_v59, %v465_v45  ;;  %v789_v59 = vld [vmem:[%s307_s29 + $0x4] sm:$0xf]  ;;  %p1005_p13 = pnand %p1004_p10, %p1000_p6 }
  0x47   : > { %v884_v42 = vpop.eup %883  ;;  %v384_v43 = vsel %vm364_vm0, %v882_v40, 0.0  ;;  %v490_v63 = vrot.slane %v489_v55, 1  ;;  %v420_v0 = vadd.f32 %v419_v57, %v410_v53  ;;  %v444_v4 = vadd.f32 %v443_v61, %v434_v58  ;;  %v447_v61 = vld [vmem:[#allocation2 + $0x2] sm:$0x1] }
  0x48   : > { %v886_v47 = vpop.eup %885  ;;  %v385_v48 = vsel %vm364_vm0, %v884_v42, 0.0  ;;  %v468_v6 = vadd.f32 %v467_v1, %v458_v62 }
  0x49   : > { %v888_v50 = vpop.eup %887  ;;  %v386_v51 = vadd.f32 %v385_v48, %v384_v43  ;;  %v387_v52 = vsel %vm364_vm0, %v886_v47, 0.0  ;;  %v491_v5 = vadd.f32 %v490_v63, %v489_v55  ;;  %421 = vst [vmem:[#allocation2 + $0x8] sm:$0x1] %v420_v0 }
  0x4a   : > { %v389_v56 = vsel %vm364_vm0, %v888_v50, 0.0  ;;  %445 = vst [vmem:[#allocation2 + $0x9] sm:$0x1] %v444_v4 }
  0x4b   : > { %v388_v60 = vadd.f32 %v387_v52, %v386_v51  ;;  %v492_v7 = vadd.f32 %v491_v5, %v482_v2  ;;  %469 = vst [vmem:[#allocation2 + $0xa] sm:$0x1] %v468_v6  ;;  %v790_v6 = vld [vmem:[%s307_s29 + $0x8] sm:$0xf] }
  0x4d   : > { %v390_v3 = vadd.f32 %v389_v56, %v388_v60  ;;  %493 = vst [vmem:[#allocation2 + $0xb] sm:$0x1] %v492_v7  ;;  %v423_v60 = vld [vmem:[#allocation2 + $0x1] sm:$0x1]  ;;  %v471_v7 = vld [vmem:[#allocation2 + $0x3] sm:$0x1] }
  0x4f   : > { %889 = vrcp.f32 %v390_v3 }
  0x54   : > { %v563_v34 = vld [vmem:[#allocation2 + $0x8] sm:$0xf] }
  0x55   : > { %v890_v8 = vpop.eup %889  ;;  %566 = vst [vmem:[%s1309_s27 + $0x8] sm:$0xf] %v563_v34 }
  0x56   : > { %v392_v9 = vmul.f32 %v890_v8, %v882_v40  ;;  %v1280_v11 = vmul.f32 %v890_v8, %v884_v42  ;;  %v1282_v12 = vmul.f32 %v890_v8, %v886_v47  ;;  %v1285_v13 = vmul.f32 %v890_v8, %v888_v50  ;;  %v398_v50 = vld [vmem:[#allocation2] sm:$0x1] }
  0x58   : > { %v399_v14 = vsel %vm397_vm1, %v392_v9, 0.0  ;;  %v496_v15 = vsel %vm364_vm0, %v392_v9, 0.0  ;;  %v424_v16 = vsel %vm422_vm2, %v1280_v11, 0.0  ;;  %v448_v17 = vsel %vm446_vm3, %v1282_v12, 0.0 }
  0x59   : > { %v400_v18 = vsel %vm364_vm0, %v399_v14, 0.0  ;;  %v497_v19 = vrot.slane %v496_v15, 4  ;;  %v425_v20 = vsel %vm364_vm0, %v424_v16, 0.0  ;;  %v449_v21 = vsel %vm364_vm0, %v448_v17, 0.0  ;;  %v791_v16 = vld [vmem:[%s307_s29 + $0xc] sm:$0xf] }
  0x5a   : > { %v401_v22 = vrot.slane %v400_v18, 4  ;;  %v426_v23 = vrot.slane %v425_v20, 4  ;;  %v450_v24 = vrot.slane %v449_v21, 4  ;;  %v472_v25 = vsel %vm470_vm4, %v1285_v13, 0.0 }
  0x5b   : > { %v498_v26 = vadd.f32 %v497_v19, %v496_v15  ;;  %v473_v27 = vsel %vm364_vm0, %v472_v25, 0.0  ;;  %v503_v28 = vsel %vm364_vm0, %v1280_v11, 0.0  ;;  %v510_v29 = vsel %vm364_vm0, %v1282_v12, 0.0 }
  0x5c   : > { %v402_v30 = vadd.f32 %v401_v22, %v400_v18  ;;  %v427_v31 = vadd.f32 %v426_v23, %v425_v20  ;;  %v451_v32 = vadd.f32 %v450_v24, %v449_v21  ;;  %v474_v33 = vrot.slane %v473_v27, 4 }
  0x5d   : > { %v499_v35 = vrot.slane %v498_v26, 2  ;;  %v504_v36 = vrot.slane %v503_v28, 4  ;;  %v511_v37 = vrot.slane %v510_v29, 4  ;;  %v517_v10 = vsel %vm364_vm0, %v1285_v13, 0.0 }
  0x5e   : > { %v403_v38 = vrot.slane %v402_v30, 2  ;;  %v428_v39 = vrot.slane %v427_v31, 2  ;;  %v452_v40 = vrot.slane %v451_v32, 2  ;;  %v475_v41 = vadd.f32 %v474_v33, %v473_v27  ;;  %v495_v27 = vld [vmem:[#allocation2 + $0x4] sm:$0xf] }
  0x5f   : > { %v500_v42 = vadd.f32 %v499_v35, %v498_v26  ;;  %v505_v43 = vadd.f32 %v504_v36, %v503_v28  ;;  %v512_v44 = vadd.f32 %v511_v37, %v510_v29  ;;  %v518_v45 = vrot.slane %v517_v10, 4 }
  0x60   : > { %v404_v46 = vadd.f32 %v403_v38, %v402_v30  ;;  %v429_v47 = vadd.f32 %v428_v39, %v427_v31  ;;  %v453_v48 = vadd.f32 %v452_v40, %v451_v32  ;;  %v476_v49 = vrot.slane %v475_v41, 2  ;;  %v548_v38 = vld [vmem:[#allocation3] sm:$0x1] }
  0x61   : > { %v501_v51 = vrot.slane %v500_v42, 1  ;;  %v506_v52 = vrot.slane %v505_v43, 2  ;;  %v513_v53 = vrot.slane %v512_v44, 2  ;;  %v519_v54 = vadd.f32 %v518_v45, %v517_v10 }
  0x62   : > { %v405_v55 = vrot.slane %v404_v46, 1  ;;  %v430_v56 = vrot.slane %v429_v47, 1  ;;  %v454_v57 = vrot.slane %v453_v48, 1  ;;  %v477_v58 = vadd.f32 %v476_v49, %v475_v41 }
  0x63   : > { %v502_v62 = vadd.f32 %v501_v51, %v500_v42  ;;  %v507_v63 = vadd.f32 %v506_v52, %v505_v43  ;;  %v514_v0 = vadd.f32 %v513_v53, %v512_v44  ;;  %v520_v1 = vrot.slane %v519_v54, 2 }
  0x64   : > { %v406_v2 = vadd.f32 %v405_v55, %v404_v46  ;;  %v431_v3 = vadd.f32 %v430_v56, %v429_v47  ;;  %v455_v4 = vadd.f32 %v454_v57, %v453_v48  ;;  %v478_v5 = vrot.slane %v477_v58, 1 }
  0x65   : > { %v508_v8 = vrot.slane %v507_v63, 1  ;;  %v515_v9 = vrot.slane %v514_v0, 1  ;;  %v521_v14 = vadd.f32 %v520_v1, %v519_v54  ;;  %v539_v15 = vmul.f32 %v789_v59, %v1280_v11 }
  0x66   : > { %v407_v17 = vadd.f32 %v406_v2, %v398_v50  ;;  %v432_v18 = vadd.f32 %v431_v3, %v423_v60  ;;  %v456_v19 = vadd.f32 %v455_v4, %v447_v61  ;;  %v479_v20 = vadd.f32 %v478_v5, %v477_v58 }
  0x67   : > { %v509_v21 = vadd.f32 %v508_v8, %v507_v63  ;;  %v516_v22 = vadd.f32 %v515_v9, %v514_v0  ;;  %v522_v23 = vrot.slane %v521_v14, 1  ;;  %v542_v24 = vmul.f32 %v790_v6, %v1282_v12 }
  0x68   : > { %408 = vst [vmem:[#allocation2] sm:$0x1] %v407_v17  ;;  %v480_v25 = vadd.f32 %v479_v20, %v471_v7  ;;  %v546_v26 = vmul.f32 %v791_v16, %v1285_v13 }
  0x69   : > { %433 = vst [vmem:[#allocation2 + $0x1] sm:$0x1] %v432_v18  ;;  %v523_v11 = vadd.f32 %v522_v23, %v521_v14  ;;  %v529_v28 = vsel %vm528_vm5, %v509_v21, %v502_v62  ;;  %v543_v29 = vadd.f32 %v542_v24, %v539_v15 }
  0x6a   : > { %457 = vst [vmem:[#allocation2 + $0x2] sm:$0x1] %v456_v19  ;;  %v531_v30 = vsel %vm530_vm6, %v516_v22, %v529_v28 }
  0x6b   : > { %481 = vst [vmem:[#allocation2 + $0x3] sm:$0x1] %v480_v25  ;;  %v533_v31 = vsel %vm532_vm7, %v523_v11, %v531_v30  ;;  %v547_v12 = vadd.f32 %v546_v26, %v543_v29 }
  0x6c   : > { %v535_v32 = vadd.f32 %v533_v31, %v495_v27 }
  0x6d   : > { %v549_v33 = vsel %vm364_vm0, %v547_v12, 0.0 }
  0x6e   : > { %536 = vst [vmem:[#allocation2 + $0x4] sm:$0xf] %v535_v32  ;;  %v550_v13 = vrot.slane %v549_v33, 4 }
  0x70   : > { %v551_v34 = vadd.f32 %v550_v13, %v549_v33 }
  0x72   : > { %v552_v35 = vrot.slane %v551_v34, 2 }
  0x74   : > { %v553_v36 = vadd.f32 %v552_v35, %v551_v34 }
  0x75   : > { %v561_v37 = vld [vmem:[#allocation2] sm:$0xff]  }
  0x76   : > { %v554_v10 = vrot.slane %v553_v36, 1  ;;  %564 = vst [vmem:[%s1309_s27] sm:$0xff] %v561_v37  }
  0x77   : > { %1008 = shalt.err (!%p1005_p13)
}
  0x78   : > { %s1104_s1 = smov 64   ;;  %s1105_s17 = smov 4   ;;  %v555_v39 = vadd.f32 %v554_v10, %v553_v36 }
  0x79   : > { %805 = dma.vmem_to_hbm [thread:$0]  (%p1186_p9), %s588_s12, 192, %s590_s7, %s570_s13, %s1104_s1, %s1104_s1, %s1105_s17  }
  0x7a   : > { %v556_v40 = vadd.f32 %v555_v39, %v548_v38  ;;  %s602_s21 = scalar_lea.hbm %s1380_s4, %s1091_s18  ;;  %s346_s27 = scalar_lea.vmem [#allocation11], %s1238_s6 }
  0x7b   : > { %s604_s29 = sshll.u32 %s346_s27, 4  ;;  %s606_s30 = sshll.u32 %s602_s21, 4  ;;  %s605_s29 = int_to_ptr.vmem [resolvable:$true] %s604_s29  ;;  %s607_s30 = int_to_ptr.hbm [resolvable:$true] %s606_s30 }
  0x7c   : > { %557 = vst [vmem:[#allocation3] sm:$0x1] %v556_v40  ;;  %s575_s8 = scalar_lea.sflag [#allocation12], %s1238_s6  ;;  %s1023_s26 = sshra.s32 %s607_s30, 4  ;;  %s1024_s26 = int_to_ptr.hbm [resolvable:$true] %s1023_s26 }
  0x7d   : > { %s1025_s11 = scalar_lea.hbm %s1024_s26, 1  ;;  %s1029_s13 = scalar_lea.hbm %s1380_s4, 2 }
  0x7e   : > { %p1026_p0 = scmp.ne.s32.totalorder %s1024_s26, %s1025_s11  ;;  %p1030_p3 = scmp.lt.s32.totalorder %s1024_s26, %s1380_s4 }
  0x7f   : > { %p1031_p4 = scmp.lt.s32.totalorder %s1029_s13, %s1025_s11 }
  0x80   : > { %p1027_p1 = pnand %p1026_p0, %p1186_p9 }
  0x81   : > { %p1032_p5 = por %p1031_p4, %p1030_p3 }
  0x82   : > { %p1028_p2 = pneg %p1027_p1 }
  0x83   : > { %v567_v41 = vld [vmem:[#allocation3] sm:$0x1] }
  0x84   : > { %568 = vst [vmem:[%s346_s27] sm:$0x1] %v567_v41  ;;  %p1033_p6 = pnand %p1032_p5, %p1028_p2 }
  0x86   : > { %1036 = shalt.err (!%p1033_p6)
}
  0x87   : > { %806 = dma.vmem_to_hbm [thread:$0]  (%p1186_p9), %s605_s29, 16, %s607_s30, %s575_s8  }
  0x88 PF: > { %s1400_s22 = sld [smem:[#allocation18_spill]]  ;;  %s618_s24 = sand.u32 1, %s1079_s15  }
  0x89   : > { %p820_p7 = pnand %p772_p12, %p1193_p11  ;;  %s619_s25 = scalar_lea.sflag [#allocation6], %s618_s24 }
  0x8b   : > { %p821_p8 = pneg %p820_p7 }
  0x8d   : > { %1070 = dma.done.wait (%p821_p8), %s619_s25, 192  }
  0x8e   : > { %1072 = vsyncadd (%p821_p8), %s619_s25, 4294967104  ;;  %s629_s9 = scalar_lea.sflag [#allocation12], %s618_s24 }
  0x8f   : > { %1074 = dma.done.wait (%p821_p8), %s629_s9, 16  }
  0x90   : > { %1076 = vsyncadd (%p821_p8), %s629_s9, 4294967280  ;;  %s27_s20 = sadd.s32 1, %s1400_s22   ;;  %s1401_s28 = sld [smem:[#allocation17_spill]] }
  0x91   : > { %p24_p10 = scmp.ge.s32.totalorder %s27_s20, 4   ;;  %s1402_s17 = sld [smem:[#allocation20_spill]] }
  0x92   : > { %s1403_s5 = sld [smem:[#allocation19_spill]]  ;;  %s1404_s15 = smov %s1083_s16 }
  0x93   : > { %s1406_s18 = smov %s1095_s19 }
  0x94   :  { %26 = sbr.rel (!%p24_p10) target bundleno = 12 (0xc), region = 131 }
  0x96   : > { %s1405_s16 = smov %s1401_s28 }
  0x98   : > { %s1407_s19 = smov %s1403_s5 }
  0x99   :  { %634 = vsyncpa [#allocation5], 1 }
  0x9a   :  { %636 = vsyncpa [#allocation5 + $0x1], 1 }
  0x9b   :  { %637 = vsyncpa [#allocation8], 1 }
  0x9c   :  { %639 = vsyncpa [#allocation8 + $0x1], 1 }
  0x9d   :  { %640 = vsyncpa [#allocation6], 1 }
  0x9e   :  { %642 = vsyncpa [#allocation6 + $0x1], 1 }
  0x9f   :  { %643 = vsyncpa [#allocation12], 1 }
  0xa0   :  { %645 = vsyncpa [#allocation12 + $0x1], 1 }

</bundles_post_ra>
